<compile_context>
chip_gen: v5e
topology: v5e:2x2
jax: 0.10.0
libtpu: 0.0.40
codegen_flags: <defaults>
</compile_context>

<pallas_src>
import functools

import jax
import jax.numpy as jnp
from jax.experimental import pallas as pl
from jax.experimental.pallas import tpu as pltpu

_LANES = 128
_SUBLANES = 8


def _device_defaults():
    """(block_rows, num_slices) per TPU generation."""
    try:
        kind = jax.devices()[0].device_kind.lower()
    except Exception:  # pragma: no cover - defensive
        kind = ""
    if "v7" in kind:
        # TODO(synk): verify the leading "parallel" axis actually shards across
        # the two v7x TensorCores; if not, switch it to pltpu.CORE_PARALLEL.
        return 4096, 2
    if "v6" in kind:
        return 4096, 1
    return 2048, 1  # v5e / default


def _dice_kernel(pred_ref, gt_ref, mask_ref, inter_ref, union_ref, *,
                 br, steps, rows_valid, need_mask):
    step = pl.program_id(1)

    # Zero the small resident accumulators at the start of each slice.
    @pl.when(step == 0)
    def _():
        inter_ref[...] = jnp.zeros_like(inter_ref)
        union_ref[...] = jnp.zeros_like(union_ref)

    p = pred_ref[...].astype(jnp.float32)
    g = gt_ref[...].astype(jnp.float32)
    m = mask_ref[...].astype(jnp.float32)

    pm = p * m
    gm = g * m
    inter_c = pm * g            # pred * gt * mask
    union_c = pm + gm           # pred * mask + gt * mask

    if need_mask:
        # Ragged tail: zero contributions from rows beyond the valid row count
        # (select, not multiply, so stale/NaN garbage cannot poison the sums).
        row_start = (pl.program_id(0) * steps + step) * br
        rid = jax.lax.broadcasted_iota(jnp.int32, (br, _LANES), 0) + row_start
        valid = rid < rows_valid
        inter_c = jnp.where(valid, inter_c, 0.0)
        union_c = jnp.where(valid, union_c, 0.0)

    if br % _SUBLANES == 0:
        # vreg-granular fold of the (br, 128) contribution down to (8, 128):
        # reducing the leading axis is pure elementwise VPU adds (no relayout).
        inter_c = inter_c.reshape(br // _SUBLANES, _SUBLANES, _LANES).sum(axis=0)
        union_c = union_c.reshape(br // _SUBLANES, _SUBLANES, _LANES).sum(axis=0)

    inter_ref[0] += inter_c
    union_ref[0] += union_c


def dice_loss(pred, gt, mask, eps, *, block_rows=None, num_slices=None):
    """Dice loss matching the PyTorch module's forward."""
    assert pred.shape == gt.shape == mask.shape

    n = pred.size
    if n == 0:                                   # degenerate: 1 - 0/eps
        return jnp.asarray(1.0, dtype=jnp.float32)

    def_br, def_ns = _device_defaults()
    block_rows = def_br if block_rows is None else block_rows
    num_slices = def_ns if num_slices is None else num_slices

    rows = -(-n // _LANES)                       # cdiv(n, 128)

    def prep(x):
        flat = x.reshape(-1)                     # native dtype; reshape is free
        pad = rows * _LANES - n
        if pad:
            # Only remaining copy path; triggers only when n % 128 != 0 (rare
            # for image tensors).  Zeros are harmless under the masked sums.
            # TODO(synk): stream the <128-element tail via manual DMA instead.
            flat = jnp.pad(flat, (0, pad))
        return flat.reshape(rows, _LANES)

    p2, g2, m2 = prep(pred), prep(gt), prep(mask)

    # Block rows: a multiple of 8 (or the full row count for tiny inputs),
    # never larger than the array, so every block is a legal (partial) block.
    if rows % _SUBLANES == 0:
        br = min(block_rows, rows)
    elif rows < _SUBLANES:
        br = rows
    else:
        br = min(block_rows, (rows // _SUBLANES) * _SUBLANES)

    blocks = -(-rows // br)
    ns = max(1, min(num_slices, blocks))         # parallel slices (v7x megacore)
    steps = -(-blocks // ns)                     # reduction steps per slice
    coverage = ns * steps * br
    need_mask = coverage != rows
    need_clamp = ns * steps > blocks             # over-provisioned tail steps
    last_block = blocks - 1

    if need_clamp:
        # Clamp so no DMA ever addresses a fully out-of-range block; the
        # in-kernel row mask (which uses the *logical* row index) zeroes the
        # duplicate blocks' contributions.
        in_idx = lambda s, i: (jnp.minimum(s * steps + i, last_block), 0)
    else:
        in_idx = lambda s, i: (s * steps + i, 0)

    acc_rows = _SUBLANES if br % _SUBLANES == 0 else br

    in_spec = pl.BlockSpec((br, _LANES), in_idx)
    out_spec = pl.BlockSpec((1, acc_rows, _LANES), lambda s, i: (s, 0, 0))
    out_shape = jax.ShapeDtypeStruct((ns, acc_rows, _LANES), jnp.float32)

    itemsizes = sum(x.dtype.itemsize for x in (pred, gt, mask))
    block_bytes = br * _LANES * itemsizes        # one step's input footprint
    vmem_limit = int(max(min(2 * block_bytes + (4 << 20), 56 << 20), 16 << 20))

    cost = pl.CostEstimate(
        flops=6 * n,
        transcendentals=0,
        bytes_accessed=n * itemsizes + 2 * ns * acc_rows * _LANES * 4,
    )

    kernel = functools.partial(_dice_kernel, br=br, steps=steps,
                               rows_valid=rows, need_mask=need_mask)

    inter_p, union_p = pl.pallas_call(
        kernel,
        out_shape=(out_shape, out_shape),
        grid_spec=pltpu.PrefetchScalarGridSpec(
            num_scalar_prefetch=0,
            grid=(ns, steps),
            in_specs=[in_spec, in_spec, in_spec],
            out_specs=[out_spec, out_spec],
        ),
        compiler_params=pltpu.CompilerParams(
            dimension_semantics=("parallel", "arbitrary"),
            vmem_limit_bytes=vmem_limit,
        ),
        cost_estimate=cost,
    )(p2, g2, m2)

    # Tiny final reduction (a few KiB) done in plain XLA.
    intersection = jnp.sum(inter_p)
    union = jnp.sum(union_p) + eps
    return 1.0 - 2.0 * intersection / union


def _reference(pred, gt, mask, eps):
    intersection = (pred * gt * mask).sum()
    union = (pred * mask).sum() + (gt * mask).sum() + eps
    return 1.0 - 2.0 * intersection / union


if __name__ == "__main__":
    key = jax.random.PRNGKey(0)
    k1, k2, k3 = jax.random.split(key, 3)

    # Shapes consistent with a detection-head loss: (N, C, H, W) = (2, 4, 16, 16)
    shape = (2, 4, 16, 16)
    eps = 1e-6
    pred = jax.random.uniform(k1, shape, dtype=jnp.float32)            # probability map
    gt = (jax.random.uniform(k2, shape) > 0.5).astype(jnp.float32)     # binary target
    mask = (jax.random.uniform(k3, shape) > 0.3).astype(jnp.float32)   # valid-region mask

    loss = jax.jit(dice_loss)(pred, gt, mask, eps)
    jax.block_until_ready(loss)

    ref = _reference(pred, gt, mask, eps)
    assert jnp.allclose(loss, ref, rtol=1e-5, atol=1e-6), (loss, ref)
    # Mirror the module's `assert loss <= 1` on the concrete result.
    assert float(loss) <= 1.0

    print("KERNEL_OK")
</pallas_src>

<mosaic_0001>
module attributes {stable_mosaic.version = 11 : i64} {
  func.func @_dice_kernel(%arg0: i32, %arg1: i32, %arg2: memref<16x128xf32, #tpu.memory_space<vmem>>, %arg3: memref<16x128xf32, #tpu.memory_space<vmem>>, %arg4: memref<16x128xf32, #tpu.memory_space<vmem>>, %arg5: memref<1x8x128xf32, #tpu.memory_space<vmem>>, %arg6: memref<1x8x128xf32, #tpu.memory_space<vmem>>) attributes {dimension_semantics = [#tpu.dimension_semantics<parallel>, #tpu.dimension_semantics<arbitrary>], iteration_bounds = array<i64: 1, 1>, scalar_prefetch = 0 : i64, scratch_operands = 0 : i64, tpu.core_type = #tpu.core_type<tc>, window_params = [{transform_indices = @transform_0, window_bounds = array<i64: 16, 128>}, {transform_indices = @transform_1, window_bounds = array<i64: 16, 128>}, {transform_indices = @transform_2, window_bounds = array<i64: 16, 128>}, {transform_indices = @transform_3, window_bounds = array<i64: 1, 8, 128>}, {transform_indices = @transform_4, window_bounds = array<i64: 1, 8, 128>}]} {
    %c0_i32 = arith.constant 0 : i32
    %0 = arith.cmpi eq, %arg1, %c0_i32 : i32
    %1 = arith.extui %0 : i1 to i32
    %c0_i32_0 = arith.constant 0 : i32
    %2 = arith.cmpi ne, %1, %c0_i32_0 : i32
    scf.if %2 {
      %cst_19 = arith.constant 0.000000e+00 : f32
      %26 = vector.broadcast %cst_19 : f32 to vector<1x8x128xf32>
      %c0_20 = arith.constant 0 : index
      %c0_21 = arith.constant 0 : index
      %c0_22 = arith.constant 0 : index
      %27 = vector.load %arg5[%c0_20, %c0_21, %c0_22] : memref<1x8x128xf32, #tpu.memory_space<vmem>>, vector<1x8x128xf32>
      tpu.vector_store %arg5[%c0_20, %c0_21, %c0_22], %26 {strides = array<i32>} : memref<1x8x128xf32, #tpu.memory_space<vmem>>, vector<1x8x128xf32>,
      %cst_23 = arith.constant 0.000000e+00 : f32
      %28 = vector.broadcast %cst_23 : f32 to vector<1x8x128xf32>
      %c0_24 = arith.constant 0 : index
      %c0_25 = arith.constant 0 : index
      %c0_26 = arith.constant 0 : index
      %29 = vector.load %arg6[%c0_24, %c0_25, %c0_26] : memref<1x8x128xf32, #tpu.memory_space<vmem>>, vector<1x8x128xf32>
      tpu.vector_store %arg6[%c0_24, %c0_25, %c0_26], %28 {strides = array<i32>} : memref<1x8x128xf32, #tpu.memory_space<vmem>>, vector<1x8x128xf32>,
    } else {
    }
    %c0 = arith.constant 0 : index
    %c0_1 = arith.constant 0 : index
    %3 = vector.load %arg2[%c0, %c0_1] : memref<16x128xf32, #tpu.memory_space<vmem>>, vector<16x128xf32>
    %c0_2 = arith.constant 0 : index
    %c0_3 = arith.constant 0 : index
    %4 = vector.load %arg3[%c0_2, %c0_3] : memref<16x128xf32, #tpu.memory_space<vmem>>, vector<16x128xf32>
    %c0_4 = arith.constant 0 : index
    %c0_5 = arith.constant 0 : index
    %5 = vector.load %arg4[%c0_4, %c0_5] : memref<16x128xf32, #tpu.memory_space<vmem>>, vector<16x128xf32>
    %6 = arith.mulf %3, %5 : vector<16x128xf32>
    %7 = arith.mulf %4, %5 : vector<16x128xf32>
    %8 = arith.mulf %6, %4 : vector<16x128xf32>
    %9 = arith.addf %6, %7 : vector<16x128xf32>
    %10 = vector.shape_cast %8 : vector<16x128xf32> to vector<2x8x128xf32>
    %cst = arith.constant dense<0.000000e+00> : vector<8x128xf32>
    %11 = vector.multi_reduction <add>, %10, %cst [0] : vector<2x8x128xf32> to vector<8x128xf32>
    %12 = vector.shape_cast %9 : vector<16x128xf32> to vector<2x8x128xf32>
    %cst_6 = arith.constant dense<0.000000e+00> : vector<8x128xf32>
    %13 = vector.multi_reduction <add>, %12, %cst_6 [0] : vector<2x8x128xf32> to vector<8x128xf32>
    %c0_7 = arith.constant 0 : index
    %c0_8 = arith.constant 0 : index
    %c0_9 = arith.constant 0 : index
    %14 = vector.load %arg5[%c0_7, %c0_8, %c0_9] : memref<1x8x128xf32, #tpu.memory_space<vmem>>, vector<1x8x128xf32>
    %15 = vector.shape_cast %14 : vector<1x8x128xf32> to vector<8x128xf32>
    %16 = arith.addf %15, %11 : vector<8x128xf32>
    %c0_10 = arith.constant 0 : index
    %c0_11 = arith.constant 0 : index
    %c0_12 = arith.constant 0 : index
    %17 = vector.load %arg5[%c0_10, %c0_11, %c0_12] : memref<1x8x128xf32, #tpu.memory_space<vmem>>, vector<1x8x128xf32>
    %18 = vector.shape_cast %17 : vector<1x8x128xf32> to vector<8x128xf32>
    %19 = vector.shape_cast %16 : vector<8x128xf32> to vector<1x8x128xf32>
    tpu.vector_store %arg5[%c0_10, %c0_11, %c0_12], %19 {strides = array<i32>} : memref<1x8x128xf32, #tpu.memory_space<vmem>>, vector<1x8x128xf32>,
    %c0_13 = arith.constant 0 : index
    %c0_14 = arith.constant 0 : index
    %c0_15 = arith.constant 0 : index
    %20 = vector.load %arg6[%c0_13, %c0_14, %c0_15] : memref<1x8x128xf32, #tpu.memory_space<vmem>>, vector<1x8x128xf32>
    %21 = vector.shape_cast %20 : vector<1x8x128xf32> to vector<8x128xf32>
    %22 = arith.addf %21, %13 : vector<8x128xf32>
    %c0_16 = arith.constant 0 : index
    %c0_17 = arith.constant 0 : index
    %c0_18 = arith.constant 0 : index
    %23 = vector.load %arg6[%c0_16, %c0_17, %c0_18] : memref<1x8x128xf32, #tpu.memory_space<vmem>>, vector<1x8x128xf32>
    %24 = vector.shape_cast %23 : vector<1x8x128xf32> to vector<8x128xf32>
    %25 = vector.shape_cast %22 : vector<8x128xf32> to vector<1x8x128xf32>
    tpu.vector_store %arg6[%c0_16, %c0_17, %c0_18], %25 {strides = array<i32>} : memref<1x8x128xf32, #tpu.memory_space<vmem>>, vector<1x8x128xf32>,
    return
  }
  func.func @transform_0(%arg0: i32, %arg1: i32) -> (i32, i32) {
    %c1_i32 = arith.constant 1 : i32
    %0 = arith.muli %arg0, %c1_i32 : i32
    %1 = arith.addi %0, %arg1 : i32
    %c0_i32 = arith.constant 0 : i32
    %c0_i32_0 = arith.constant 0 : i32
    return %1, %c0_i32 : i32, i32
  }
  func.func @transform_1(%arg0: i32, %arg1: i32) -> (i32, i32) {
    %c1_i32 = arith.constant 1 : i32
    %0 = arith.muli %arg0, %c1_i32 : i32
    %1 = arith.addi %0, %arg1 : i32
    %c0_i32 = arith.constant 0 : i32
    %c0_i32_0 = arith.constant 0 : i32
    return %1, %c0_i32 : i32, i32
  }
  func.func @transform_2(%arg0: i32, %arg1: i32) -> (i32, i32) {
    %c1_i32 = arith.constant 1 : i32
    %0 = arith.muli %arg0, %c1_i32 : i32
    %1 = arith.addi %0, %arg1 : i32
    %c0_i32 = arith.constant 0 : i32
    %c0_i32_0 = arith.constant 0 : i32
    return %1, %c0_i32 : i32, i32
  }
  func.func @transform_3(%arg0: i32, %arg1: i32) -> (i32, i32, i32) {
    %c0_i32 = arith.constant 0 : i32
    %c0_i32_0 = arith.constant 0 : i32
    %c0_i32_1 = arith.constant 0 : i32
    return %arg0, %c0_i32, %c0_i32_0 : i32, i32, i32
  }
  func.func @transform_4(%arg0: i32, %arg1: i32) -> (i32, i32, i32) {
    %c0_i32 = arith.constant 0 : i32
    %c0_i32_0 = arith.constant 0 : i32
    %c0_i32_1 = arith.constant 0 : i32
    return %arg0, %c0_i32, %c0_i32_0 : i32, i32, i32
  }
}

</mosaic_0001>

<bundles_post_ra>
// kernel: dice_loss.1
= control target key start
LH: loop header
LB: loop body
LE: loop exit
PB: predicated region body
PF: predicated region fallthrough
CT: control target
= control target key end

     0   :  { %s186_s0 = inlined_call_operand.vmem [shape: f32[16,128], index: 0, kind: input, shape index: {}]   ;;  %s187_s1 = inlined_call_operand.vmem [shape: f32[16,128], index: 1, kind: input, shape index: {}]   ;;  %s188_s2 = inlined_call_operand.vmem [shape: f32[16,128], index: 2, kind: input, shape index: {}]   ;;  %s189_s3 = inlined_call_operand.vmem [shape: f32[1,8,128], index: 3, kind: output, shape index: {0}]   ;;  %s190_s4 = inlined_call_operand.vmem [shape: f32[1,8,128], index: 4, kind: output, shape index: {1}]  }
   0x1   :  { %v88_v0 = vld [vmem:[%s186_s0] sm:$0xff]  ;;  %v89_v1 = vld [vmem:[%s186_s0 + $0x8] sm:$0xff] }
   0x2   :  { %v90_v2 = vld [vmem:[%s187_s1] sm:$0xff]  ;;  %v91_v3 = vld [vmem:[%s187_s1 + $0x8] sm:$0xff] }
   0x3   :  { %v92_v4 = vld [vmem:[%s188_s2] sm:$0xff]  ;;  %v93_v5 = vld [vmem:[%s188_s2 + $0x8] sm:$0xff] }
   0x4   :  { %v94_v6 = vmul.f32 %v92_v4, %v88_v0  ;;  %v95_v7 = vmul.f32 %v93_v5, %v89_v1  ;;  %v96_v8 = vmul.f32 %v92_v4, %v90_v2  ;;  %v97_v9 = vmul.f32 %v93_v5, %v91_v3 }
   0x6   :  { %v98_v10 = vmul.f32 %v94_v6, %v90_v2  ;;  %v99_v11 = vmul.f32 %v95_v7, %v91_v3  ;;  %v100_v12 = vadd.f32 %v96_v8, %v94_v6  ;;  %v101_v13 = vadd.f32 %v97_v9, %v95_v7 }
   0x8   :  { %v102_v14 = vadd.f32 %v99_v11, %v98_v10  ;;  %v103_v15 = vadd.f32 %v101_v13, %v100_v12 }
   0xa   :  { %106 = vst [vmem:[%s189_s3] sm:$0xff] %v102_v14 }
   0xb   :  { %109 = vst [vmem:[%s190_s4] sm:$0xff] %v103_v15 }

</bundles_post_ra>
